<compile_context>
chip_gen: v7x
topology: tpu7x:2x2x1
jax: 0.10.0
libtpu: 0.0.40
codegen_flags: <defaults>
</compile_context>

<pallas_src>
import functools

import jax
import jax.numpy as jnp
from jax.experimental import pallas as pl
from jax.experimental.pallas import tpu as pltpu


# ----------------------------------------------------------------------------
# Fused Pallas kernel: whole forward pass in one launch.
# ----------------------------------------------------------------------------
def _fused_forward_kernel(num_layers, n_task, k_hops, feature_extractor, *refs):
    # ---- unpack refs (order fixed by the wrapper) ----
    x_ref, a_ref, pool_ref, embed_w_ref, embed_b_ref = refs[:5]
    idx = 5
    sgc_w = refs[idx: idx + num_layers]; idx += num_layers
    sgc_b = refs[idx: idx + num_layers]; idx += num_layers
    task_w = refs[idx: idx + n_task]; idx += n_task
    task_b = refs[idx: idx + n_task]; idx += n_task
    o_ref = refs[idx]

    f32 = jnp.float32

    # NodeFeatEmbed: single Linear (PyG MLP([F, Cin]) plain last layer)
    h = jnp.dot(x_ref[...], embed_w_ref[...], preferred_element_type=f32)
    h = h + embed_b_ref[...]

    # SGC: num_layers SGConv layers, ReLU between layers (not after the last).
    # SGConv: h <- A_hat^K h ; h <- h W + b.  K-hop loop statically unrolled.
    a = a_ref[...]
    for layer in range(num_layers):
        for _ in range(k_hops):
            h = jnp.dot(a, h, preferred_element_type=f32)
        h = jnp.dot(h, sgc_w[layer][...], preferred_element_type=f32)
        h = h + sgc_b[layer][...]
        if layer < num_layers - 1:
            h = jnp.maximum(h, 0.0)

    # readout = global_add_pool: one-hot(batch) @ h, fused epilogue on the MXU
    g = jnp.dot(pool_ref[...], h, preferred_element_type=f32)

    if not feature_extractor:
        # TaskLayer: hidden layers = Linear + (BatchNorm==identity at init)
        # + ReLU; last layer = plain Linear.
        for i in range(n_task):
            g = jnp.dot(g, task_w[i][...], preferred_element_type=f32)
            g = g + task_b[i][...]
            if i < n_task - 1:
                g = jnp.maximum(g, 0.0)

    o_ref[...] = g.astype(o_ref.dtype)


def pygsgc_forward(params, x, a_hat, pool_mat, k_hops, num_layers,
                   feature_extractor=False):
    """Single fused pallas_call over the whole forward pass."""
    num_graphs = pool_mat.shape[0]

    inputs = [
        x,
        a_hat,
        pool_mat,
        params["embed_w"],
        params["embed_b"].reshape(1, -1),
    ]
    inputs += list(params["sgc_w"])
    inputs += [b.reshape(1, -1) for b in params["sgc_b"]]

    if feature_extractor:
        n_task = 0
        out_dim = params["sgc_w"][-1].shape[1]
    else:
        n_task = len(params["task_w"])
        out_dim = params["task_w"][-1].shape[1]
        inputs += list(params["task_w"])
        inputs += [b.reshape(1, -1) for b in params["task_b"]]

    inputs = [a.astype(jnp.float32) for a in inputs]

    # All operands are a few KiB: full-array single blocks, everything VMEM
    # resident for the whole (grid=(1,)) launch.
    in_specs = [pl.BlockSpec(a.shape, lambda i: (0, 0)) for a in inputs]

    return pl.pallas_call(
        functools.partial(_fused_forward_kernel, num_layers, n_task, k_hops,
                          feature_extractor),
        out_shape=jax.ShapeDtypeStruct((num_graphs, out_dim), jnp.float32),
        grid=(1,),
        in_specs=in_specs,
        out_specs=pl.BlockSpec((num_graphs, out_dim), lambda i: (0, 0)),
        compiler_params=pltpu.CompilerParams(
            dimension_semantics=("arbitrary",)),
    )(*inputs)


# ----------------------------------------------------------------------------
# Parameter init / graph preprocessing (plain JAX glue)
# ----------------------------------------------------------------------------
def init_params(key, node_feat_size, in_channel, hidden_channel, out_channel,
                num_layers, dnn_layers, output_size):
    ks = iter(jax.random.split(key, 64))
    p = {}

    def lin(kin, kout):
        kw = next(ks)
        kb = next(ks)
        scale = 1.0 / jnp.sqrt(jnp.float32(kin))
        w = jax.random.uniform(kw, (kin, kout), jnp.float32, -scale, scale)
        b = jax.random.uniform(kb, (kout,), jnp.float32, -scale, scale)
        return w, b

    # NodeFeatEmbed: MLP([node_feat_size, in_channel]) -> single Linear
    p["embed_w"], p["embed_b"] = lin(node_feat_size, in_channel)

    # SGC (BasicGNN of SGConv): in->hidden, (hidden->hidden)*, hidden->out
    dims = ([in_channel] + [hidden_channel] * (num_layers - 1) + [out_channel])
    p["sgc_w"], p["sgc_b"] = [], []
    for i in range(num_layers):
        w, b = lin(dims[i], dims[i + 1])
        p["sgc_w"].append(w)
        p["sgc_b"].append(b)

    # TaskLayer: MLP([out_channel] + dnn_layers + [output_size])
    mlp_dims = [out_channel] + dnn_layers + [output_size]
    p["task_w"], p["task_b"] = [], []
    for i in range(len(mlp_dims) - 1):
        w, b = lin(mlp_dims[i], mlp_dims[i + 1])
        p["task_w"].append(w)
        p["task_b"].append(b)
    return p


def build_a_hat(edge_index, num_nodes):
    """Dense D^-1/2 (A + I) D^-1/2 (SGConv gcn_norm with self-loops)."""
    src, dst = edge_index
    a = jnp.zeros((num_nodes, num_nodes), jnp.float32)
    a = a.at[dst, src].add(1.0)                 # message src -> dst
    a = a + jnp.eye(num_nodes, dtype=jnp.float32)
    deg = jnp.sum(a, axis=1)
    dinv = 1.0 / jnp.sqrt(deg)
    return dinv[:, None] * a * dinv[None, :]


def pygsgc_reference(params, x, a_hat, pool_mat, k_hops, num_layers):
    h = x @ params["embed_w"] + params["embed_b"]
    for i in range(num_layers):
        for _ in range(k_hops):
            h = a_hat @ h
        h = h @ params["sgc_w"][i] + params["sgc_b"][i]
        if i < num_layers - 1:
            h = jnp.maximum(h, 0.0)
    g = pool_mat @ h
    n_task = len(params["task_w"])
    for i in range(n_task):
        g = g @ params["task_w"][i] + params["task_b"][i]
        if i < n_task - 1:
            g = jnp.maximum(g, 0.0)
    return g


# ----------------------------------------------------------------------------
if __name__ == "__main__":
    # opt.args (small, consistent with the module)
    ATOM_FEAT = 16      # AtomFeatureSize
    SGC_IN = 32         # SGCInputSize
    SGC_HID = 32        # SGCHiddenSize
    FP_SIZE = 32        # FPSize
    SGC_K = 2           # SGCK
    SGC_LAYERS = 2      # SGCLayers
    DNN_LAYERS = [16]   # DNNLayers
    OUT_SIZE = 1        # OutputSize
    # SGCReadout = 'Add'

    # Small batched molecular graph: 2 graphs, 6 nodes each (12 nodes total),
    # each graph is an undirected 6-cycle.
    num_nodes, num_graphs = 12, 2
    src, dst = [], []
    for g in range(num_graphs):
        base = g * 6
        for i in range(6):
            a, b = base + i, base + (i + 1) % 6
            src += [a, b]
            dst += [b, a]
    edge_index = jnp.array([src, dst], dtype=jnp.int32)     # [2, E]
    batch = jnp.array([0] * 6 + [1] * 6, dtype=jnp.int32)   # [N]

    key = jax.random.PRNGKey(0)
    k_x, k_p = jax.random.split(key)
    x = jax.random.normal(k_x, (num_nodes, ATOM_FEAT), jnp.float32)

    params = init_params(k_p, ATOM_FEAT, SGC_IN, SGC_HID, FP_SIZE,
                         SGC_LAYERS, DNN_LAYERS, OUT_SIZE)

    a_hat = build_a_hat(edge_index, num_nodes)
    pool_mat = (batch[None, :] == jnp.arange(num_graphs)[:, None]
                ).astype(jnp.float32)                        # [G, N] add-pool

    out = pygsgc_forward(params, x, a_hat, pool_mat, SGC_K, SGC_LAYERS)
    out = jax.block_until_ready(out)

    ref = pygsgc_reference(params, x, a_hat, pool_mat, SGC_K, SGC_LAYERS)
    assert out.shape == (num_graphs, OUT_SIZE), out.shape
    assert jnp.allclose(out, ref, atol=1e-4, rtol=1e-4), (out, ref)

    # Also exercise the FeatureExtractor=True path (graph fingerprints).
    fp = pygsgc_forward(params, x, a_hat, pool_mat, SGC_K, SGC_LAYERS,
                        feature_extractor=True)
    fp = jax.block_until_ready(fp)
    assert fp.shape == (num_graphs, FP_SIZE), fp.shape

    print("KERNEL_OK")
</pallas_src>

<mosaic_0001>
module attributes {stable_mosaic.version = 11 : i64} {
  func.func @_fused_forward_kernel(%arg0: i32, %arg1: memref<12x16xf32, #tpu.memory_space<vmem>>, %arg2: memref<12x12xf32, #tpu.memory_space<vmem>>, %arg3: memref<2x12xf32, #tpu.memory_space<vmem>>, %arg4: memref<16x32xf32, #tpu.memory_space<vmem>>, %arg5: memref<1x32xf32, #tpu.memory_space<vmem>>, %arg6: memref<32x32xf32, #tpu.memory_space<vmem>>, %arg7: memref<32x32xf32, #tpu.memory_space<vmem>>, %arg8: memref<1x32xf32, #tpu.memory_space<vmem>>, %arg9: memref<1x32xf32, #tpu.memory_space<vmem>>, %arg10: memref<32x16xf32, #tpu.memory_space<vmem>>, %arg11: memref<16x1xf32, #tpu.memory_space<vmem>>, %arg12: memref<1x16xf32, #tpu.memory_space<vmem>>, %arg13: memref<1x1xf32, #tpu.memory_space<vmem>>, %arg14: memref<2x1xf32, #tpu.memory_space<vmem>>) attributes {dimension_semantics = [#tpu.dimension_semantics<arbitrary>], iteration_bounds = array<i64: 1>, scalar_prefetch = 0 : i64, scratch_operands = 0 : i64, tpu.core_type = #tpu.core_type<tc>, window_params = [{pipeline_mode = #tpu.pipeline_mode<synchronous>, transform_indices = @transform_0, window_bounds = array<i64: 12, 16>}, {pipeline_mode = #tpu.pipeline_mode<synchronous>, transform_indices = @transform_1, window_bounds = array<i64: 12, 12>}, {pipeline_mode = #tpu.pipeline_mode<synchronous>, transform_indices = @transform_2, window_bounds = array<i64: 2, 12>}, {pipeline_mode = #tpu.pipeline_mode<synchronous>, transform_indices = @transform_3, window_bounds = array<i64: 16, 32>}, {pipeline_mode = #tpu.pipeline_mode<synchronous>, transform_indices = @transform_4, window_bounds = array<i64: 1, 32>}, {pipeline_mode = #tpu.pipeline_mode<synchronous>, transform_indices = @transform_5, window_bounds = array<i64: 32, 32>}, {pipeline_mode = #tpu.pipeline_mode<synchronous>, transform_indices = @transform_6, window_bounds = array<i64: 32, 32>}, {pipeline_mode = #tpu.pipeline_mode<synchronous>, transform_indices = @transform_7, window_bounds = array<i64: 1, 32>}, {pipeline_mode = #tpu.pipeline_mode<synchronous>, transform_indices = @transform_8, window_bounds = array<i64: 1, 32>}, {pipeline_mode = #tpu.pipeline_mode<synchronous>, transform_indices = @transform_9, window_bounds = array<i64: 32, 16>}, {pipeline_mode = #tpu.pipeline_mode<synchronous>, transform_indices = @transform_10, window_bounds = array<i64: 16, 1>}, {pipeline_mode = #tpu.pipeline_mode<synchronous>, transform_indices = @transform_11, window_bounds = array<i64: 1, 16>}, {pipeline_mode = #tpu.pipeline_mode<synchronous>, transform_indices = @transform_12, window_bounds = array<i64: 1, 1>}, {pipeline_mode = #tpu.pipeline_mode<synchronous>, transform_indices = @transform_13, window_bounds = array<i64: 2, 1>}]} {
    %c0 = arith.constant 0 : index
    %c0_0 = arith.constant 0 : index
    %0 = vector.load %arg1[%c0, %c0_0] : memref<12x16xf32, #tpu.memory_space<vmem>>, vector<12x16xf32>
    %c0_1 = arith.constant 0 : index
    %c0_2 = arith.constant 0 : index
    %1 = vector.load %arg4[%c0_1, %c0_2] : memref<16x32xf32, #tpu.memory_space<vmem>>, vector<16x32xf32>
    %cst = arith.constant dense<0.000000e+00> : vector<12x32xf32>
    %2 = tpu.matmul %0, %1, %cst {dimension_numbers = #tpu.dot_dimension_numbers<[1], [0], [0], [1], [0, 0, 1, 1], [], []>} : vector<12x16xf32>, vector<16x32xf32>, vector<12x32xf32> -> vector<12x32xf32>
    %c0_3 = arith.constant 0 : index
    %c0_4 = arith.constant 0 : index
    %3 = vector.load %arg5[%c0_3, %c0_4] : memref<1x32xf32, #tpu.memory_space<vmem>>, vector<1x32xf32>
    %4 = vector.broadcast %3 : vector<1x32xf32> to vector<12x32xf32>
    %5 = arith.addf %2, %4 : vector<12x32xf32>
    %c0_5 = arith.constant 0 : index
    %c0_6 = arith.constant 0 : index
    %6 = vector.load %arg2[%c0_5, %c0_6] : memref<12x12xf32, #tpu.memory_space<vmem>>, vector<12x12xf32>
    %cst_7 = arith.constant dense<0.000000e+00> : vector<12x32xf32>
    %7 = tpu.matmul %6, %5, %cst_7 {dimension_numbers = #tpu.dot_dimension_numbers<[1], [0], [0], [1], [0, 0, 1, 1], [], []>} : vector<12x12xf32>, vector<12x32xf32>, vector<12x32xf32> -> vector<12x32xf32>
    %cst_8 = arith.constant dense<0.000000e+00> : vector<12x32xf32>
    %8 = tpu.matmul %6, %7, %cst_8 {dimension_numbers = #tpu.dot_dimension_numbers<[1], [0], [0], [1], [0, 0, 1, 1], [], []>} : vector<12x12xf32>, vector<12x32xf32>, vector<12x32xf32> -> vector<12x32xf32>
    %c0_9 = arith.constant 0 : index
    %c0_10 = arith.constant 0 : index
    %9 = vector.load %arg6[%c0_9, %c0_10] : memref<32x32xf32, #tpu.memory_space<vmem>>, vector<32x32xf32>
    %cst_11 = arith.constant dense<0.000000e+00> : vector<12x32xf32>
    %10 = tpu.matmul %8, %9, %cst_11 {dimension_numbers = #tpu.dot_dimension_numbers<[1], [0], [0], [1], [0, 0, 1, 1], [], []>} : vector<12x32xf32>, vector<32x32xf32>, vector<12x32xf32> -> vector<12x32xf32>
    %c0_12 = arith.constant 0 : index
    %c0_13 = arith.constant 0 : index
    %11 = vector.load %arg8[%c0_12, %c0_13] : memref<1x32xf32, #tpu.memory_space<vmem>>, vector<1x32xf32>
    %12 = vector.broadcast %11 : vector<1x32xf32> to vector<12x32xf32>
    %13 = arith.addf %10, %12 : vector<12x32xf32>
    %cst_14 = arith.constant 0.000000e+00 : f32
    %14 = vector.broadcast %cst_14 : f32 to vector<12x32xf32>
    %15 = arith.maximumf %13, %14 : vector<12x32xf32>
    %cst_15 = arith.constant dense<0.000000e+00> : vector<12x32xf32>
    %16 = tpu.matmul %6, %15, %cst_15 {dimension_numbers = #tpu.dot_dimension_numbers<[1], [0], [0], [1], [0, 0, 1, 1], [], []>} : vector<12x12xf32>, vector<12x32xf32>, vector<12x32xf32> -> vector<12x32xf32>
    %cst_16 = arith.constant dense<0.000000e+00> : vector<12x32xf32>
    %17 = tpu.matmul %6, %16, %cst_16 {dimension_numbers = #tpu.dot_dimension_numbers<[1], [0], [0], [1], [0, 0, 1, 1], [], []>} : vector<12x12xf32>, vector<12x32xf32>, vector<12x32xf32> -> vector<12x32xf32>
    %c0_17 = arith.constant 0 : index
    %c0_18 = arith.constant 0 : index
    %18 = vector.load %arg7[%c0_17, %c0_18] : memref<32x32xf32, #tpu.memory_space<vmem>>, vector<32x32xf32>
    %cst_19 = arith.constant dense<0.000000e+00> : vector<12x32xf32>
    %19 = tpu.matmul %17, %18, %cst_19 {dimension_numbers = #tpu.dot_dimension_numbers<[1], [0], [0], [1], [0, 0, 1, 1], [], []>} : vector<12x32xf32>, vector<32x32xf32>, vector<12x32xf32> -> vector<12x32xf32>
    %c0_20 = arith.constant 0 : index
    %c0_21 = arith.constant 0 : index
    %20 = vector.load %arg9[%c0_20, %c0_21] : memref<1x32xf32, #tpu.memory_space<vmem>>, vector<1x32xf32>
    %21 = vector.broadcast %20 : vector<1x32xf32> to vector<12x32xf32>
    %22 = arith.addf %19, %21 : vector<12x32xf32>
    %c0_22 = arith.constant 0 : index
    %c0_23 = arith.constant 0 : index
    %23 = vector.load %arg3[%c0_22, %c0_23] : memref<2x12xf32, #tpu.memory_space<vmem>>, vector<2x12xf32>
    %cst_24 = arith.constant dense<0.000000e+00> : vector<2x32xf32>
    %24 = tpu.matmul %23, %22, %cst_24 {dimension_numbers = #tpu.dot_dimension_numbers<[1], [0], [0], [1], [0, 0, 1, 1], [], []>} : vector<2x12xf32>, vector<12x32xf32>, vector<2x32xf32> -> vector<2x32xf32>
    %c0_25 = arith.constant 0 : index
    %c0_26 = arith.constant 0 : index
    %25 = vector.load %arg10[%c0_25, %c0_26] : memref<32x16xf32, #tpu.memory_space<vmem>>, vector<32x16xf32>
    %cst_27 = arith.constant dense<0.000000e+00> : vector<2x16xf32>
    %26 = tpu.matmul %24, %25, %cst_27 {dimension_numbers = #tpu.dot_dimension_numbers<[1], [0], [0], [1], [0, 0, 1, 1], [], []>} : vector<2x32xf32>, vector<32x16xf32>, vector<2x16xf32> -> vector<2x16xf32>
    %c0_28 = arith.constant 0 : index
    %c0_29 = arith.constant 0 : index
    %27 = vector.load %arg12[%c0_28, %c0_29] : memref<1x16xf32, #tpu.memory_space<vmem>>, vector<1x16xf32>
    %28 = vector.broadcast %27 : vector<1x16xf32> to vector<2x16xf32>
    %29 = arith.addf %26, %28 : vector<2x16xf32>
    %cst_30 = arith.constant 0.000000e+00 : f32
    %30 = vector.broadcast %cst_30 : f32 to vector<2x16xf32>
    %31 = arith.maximumf %29, %30 : vector<2x16xf32>
    %c0_31 = arith.constant 0 : index
    %c0_32 = arith.constant 0 : index
    %32 = vector.load %arg11[%c0_31, %c0_32] : memref<16x1xf32, #tpu.memory_space<vmem>>, vector<16x1xf32>
    %cst_33 = arith.constant dense<0.000000e+00> : vector<2x1xf32>
    %33 = tpu.matmul %31, %32, %cst_33 {dimension_numbers = #tpu.dot_dimension_numbers<[1], [0], [0], [1], [0, 0, 1, 1], [], []>} : vector<2x16xf32>, vector<16x1xf32>, vector<2x1xf32> -> vector<2x1xf32>
    %c0_34 = arith.constant 0 : index
    %c0_35 = arith.constant 0 : index
    %34 = vector.load %arg13[%c0_34, %c0_35] : memref<1x1xf32, #tpu.memory_space<vmem>>, vector<1x1xf32>
    %35 = vector.broadcast %34 : vector<1x1xf32> to vector<2x1xf32>
    %36 = arith.addf %33, %35 : vector<2x1xf32>
    %c0_36 = arith.constant 0 : index
    %c0_37 = arith.constant 0 : index
    %37 = vector.load %arg14[%c0_36, %c0_37] : memref<2x1xf32, #tpu.memory_space<vmem>>, vector<2x1xf32>
    tpu.vector_store %arg14[%c0_36, %c0_37], %36 {strides = array<i32>} : memref<2x1xf32, #tpu.memory_space<vmem>>, vector<2x1xf32>,
    return
  }
  func.func @transform_0(%arg0: i32) -> (i32, i32) {
    %c0_i32 = arith.constant 0 : i32
    %c0_i32_0 = arith.constant 0 : i32
    %c0_i32_1 = arith.constant 0 : i32
    return %c0_i32, %c0_i32_0 : i32, i32
  }
  func.func @transform_1(%arg0: i32) -> (i32, i32) {
    %c0_i32 = arith.constant 0 : i32
    %c0_i32_0 = arith.constant 0 : i32
    %c0_i32_1 = arith.constant 0 : i32
    return %c0_i32, %c0_i32_0 : i32, i32
  }
  func.func @transform_2(%arg0: i32) -> (i32, i32) {
    %c0_i32 = arith.constant 0 : i32
    %c0_i32_0 = arith.constant 0 : i32
    %c0_i32_1 = arith.constant 0 : i32
    return %c0_i32, %c0_i32_0 : i32, i32
  }
  func.func @transform_3(%arg0: i32) -> (i32, i32) {
    %c0_i32 = arith.constant 0 : i32
    %c0_i32_0 = arith.constant 0 : i32
    %c0_i32_1 = arith.constant 0 : i32
    return %c0_i32, %c0_i32_0 : i32, i32
  }
  func.func @transform_4(%arg0: i32) -> (i32, i32) {
    %c0_i32 = arith.constant 0 : i32
    %c0_i32_0 = arith.constant 0 : i32
    %c0_i32_1 = arith.constant 0 : i32
    return %c0_i32, %c0_i32_0 : i32, i32
  }
  func.func @transform_5(%arg0: i32) -> (i32, i32) {
    %c0_i32 = arith.constant 0 : i32
    %c0_i32_0 = arith.constant 0 : i32
    %c0_i32_1 = arith.constant 0 : i32
    return %c0_i32, %c0_i32_0 : i32, i32
  }
  func.func @transform_6(%arg0: i32) -> (i32, i32) {
    %c0_i32 = arith.constant 0 : i32
    %c0_i32_0 = arith.constant 0 : i32
    %c0_i32_1 = arith.constant 0 : i32
    return %c0_i32, %c0_i32_0 : i32, i32
  }
  func.func @transform_7(%arg0: i32) -> (i32, i32) {
    %c0_i32 = arith.constant 0 : i32
    %c0_i32_0 = arith.constant 0 : i32
    %c0_i32_1 = arith.constant 0 : i32
    return %c0_i32, %c0_i32_0 : i32, i32
  }
  func.func @transform_8(%arg0: i32) -> (i32, i32) {
    %c0_i32 = arith.constant 0 : i32
    %c0_i32_0 = arith.constant 0 : i32
    %c0_i32_1 = arith.constant 0 : i32
    return %c0_i32, %c0_i32_0 : i32, i32
  }
  func.func @transform_9(%arg0: i32) -> (i32, i32) {
    %c0_i32 = arith.constant 0 : i32
    %c0_i32_0 = arith.constant 0 : i32
    %c0_i32_1 = arith.constant 0 : i32
    return %c0_i32, %c0_i32_0 : i32, i32
  }
  func.func @transform_10(%arg0: i32) -> (i32, i32) {
    %c0_i32 = arith.constant 0 : i32
    %c0_i32_0 = arith.constant 0 : i32
    %c0_i32_1 = arith.constant 0 : i32
    return %c0_i32, %c0_i32_0 : i32, i32
  }
  func.func @transform_11(%arg0: i32) -> (i32, i32) {
    %c0_i32 = arith.constant 0 : i32
    %c0_i32_0 = arith.constant 0 : i32
    %c0_i32_1 = arith.constant 0 : i32
    return %c0_i32, %c0_i32_0 : i32, i32
  }
  func.func @transform_12(%arg0: i32) -> (i32, i32) {
    %c0_i32 = arith.constant 0 : i32
    %c0_i32_0 = arith.constant 0 : i32
    %c0_i32_1 = arith.constant 0 : i32
    return %c0_i32, %c0_i32_0 : i32, i32
  }
  func.func @transform_13(%arg0: i32) -> (i32, i32) {
    %c0_i32 = arith.constant 0 : i32
    %c0_i32_0 = arith.constant 0 : i32
    %c0_i32_1 = arith.constant 0 : i32
    return %c0_i32, %c0_i32_0 : i32, i32
  }
}

</mosaic_0001>

<bundles_post_ra>
// kernel: tpu_custom_call.1
= control target key start
LH: loop header
LB: loop body
LE: loop exit
PB: predicated region body
PF: predicated region fallthrough
CT: control target
= control target key end

     0   :  { %s1520_s0 = inlined_call_operand.hbm [shape: f32[12,16], index: 0, kind: input, shape index: {}]   ;;  %s1521_s1 = inlined_call_operand.hbm [shape: f32[12,12], index: 1, kind: input, shape index: {}]   ;;  %s1522_s2 = inlined_call_operand.hbm [shape: f32[2,12], index: 2, kind: input, shape index: {}]   ;;  %s1523_s3 = inlined_call_operand.hbm [shape: f32[16,32], index: 3, kind: input, shape index: {}]   ;;  %s1524_s4 = inlined_call_operand.vmem [shape: f32[1,32], index: 4, kind: input, shape index: {}]   ;;  %s1525_s5 = inlined_call_operand.vmem [shape: f32[32,32], index: 5, kind: input, shape index: {}]   ;;  %s1526_s6 = inlined_call_operand.vmem [shape: f32[32,32], index: 6, kind: input, shape index: {}]   ;;  %s1527_s7 = inlined_call_operand.vmem [shape: f32[1,32], index: 7, kind: input, shape index: {}]   ;;  %s1528_s8 = inlined_call_operand.vmem [shape: f32[1,32], index: 8, kind: input, shape index: {}]   ;;  %s1529_s9 = inlined_call_operand.vmem [shape: f32[32,16], index: 9, kind: input, shape index: {}]   ;;  %s1530_s10 = inlined_call_operand.vmem [shape: f32[16,1], index: 10, kind: input, shape index: {}]   ;;  %s1531_s11 = inlined_call_operand.vmem [shape: f32[1,16], index: 11, kind: input, shape index: {}]   ;;  %s1532_s12 = inlined_call_operand.<no memory space> [shape: f32[1,1], index: 12, kind: input, shape index: {}]   ;;  %s1533_s13 = inlined_call_operand.vmem [shape: f32[2,1], index: 13, kind: output, shape index: {}]  }
   0x1   :  { %v18_v0 = vstv %s1532_s12 }
   0x2   :  { %19 = vst [vmem:[#allocation2] sm:$0x1] %v18_v0 }
   0x3   :  { %20 = vsyncpa [#allocation4], 0 }
   0x4   :  { %21 = vsyncpa [#allocation6], 0 }
   0x5   :  { %22 = vsyncpa [#allocation9], 0  ;;  %s1267_s27 = smov [#allocation5]   ;;  %s1268_s29 = smov [#allocation3]  }
   0x6   :  { %s40_s28 = sshll.u32 %s1267_s27, 4  ;;  %s28_s30 = sshll.u32 %s1268_s29, 4  ;;  %s41_s28 = int_to_ptr.vmem [resolvable:$true] %s40_s28  ;;  %s1350_s30 = int_to_ptr.vmem [resolvable:$true] %s28_s30 }
   0x7   :  { %s1173_s16 = scalar_lea.hbm %s1521_s1, 256 }
   0x8   :  { %p1174_p0 = scmp.ne.s32.totalorder %s1521_s1, %s1173_s16  ;;  %p1177_p1 = scmp.lt.u32.totalorder %s1173_s16, %s1521_s1 }
   0xa   :  { %p1179_p2 = pnand %p1177_p1, %p1174_p0 }
   0xc   :  { %1182 = shalt.err (!%p1179_p2)
}
   0xd   :  { %s1183_s20 = scalar_lea.vmem %s41_s28, 256  ;;  %p1188_p4 = scmp.lt.s32.totalorder %s41_s28, %s41_s28 }
   0xe   :  { %p1184_p3 = scmp.ne.s32.totalorder %s41_s28, %s1183_s20  ;;  %p1189_p5 = scmp.lt.s32.totalorder %s1183_s20, %s1183_s20 }
  0x10   :  { %p1190_p6 = por %p1189_p5, %p1188_p4 }
  0x12   :  { %p1191_p7 = pnand %p1190_p6, %p1184_p3 }
  0x14   :  { %1194 = shalt.err (!%p1191_p7)
}
  0x15   :  { %s1269_s21 = smov 128   ;;  %s1270_s22 = smov 8  }
  0x16   :  { %46 = dma.hbm_to_vmem [thread:$0]  %s1521_s1, 256, %s41_s28, [#allocation6], %s1269_s21, %s1269_s21, %s1270_s22  }
  0x17   :  { %s1195_s27 = scalar_lea.hbm %s1520_s0, 256 }
  0x18   :  { %p1196_p8 = scmp.ne.s32.totalorder %s1520_s0, %s1195_s27  ;;  %p1199_p9 = scmp.lt.u32.totalorder %s1195_s27, %s1520_s0 }
  0x1a   :  { %p1201_p10 = pnand %p1199_p9, %p1196_p8 }
  0x1c   :  { %1204 = shalt.err (!%p1201_p10)
}
  0x1d   :  { %s1205_s17 = scalar_lea.vmem %s1350_s30, 256  ;;  %p1210_p12 = scmp.lt.s32.totalorder %s1350_s30, %s1350_s30 }
  0x1e   :  { %p1206_p11 = scmp.ne.s32.totalorder %s1350_s30, %s1205_s17  ;;  %p1211_p13 = scmp.lt.s32.totalorder %s1205_s17, %s1205_s17 }
  0x20   :  { %p1212_p0 = por %p1211_p13, %p1210_p12 }
  0x22   :  { %p1213_p1 = pnand %p1212_p0, %p1206_p11 }
  0x24   :  { %1216 = shalt.err (!%p1213_p1)
}
  0x25   :  { %34 = dma.hbm_to_vmem [thread:$0]  %s1520_s0, 256, %s1350_s30, [#allocation4], %s1269_s21, %s1269_s21, %s1270_s22  }
  0x26   :  { %s1271_s18 = smov [#allocation7]   ;;  %s1272_s19 = smov [#allocation8]  }
  0x27   :  { %s53_s12 = sshll.u32 %s1271_s18, 4  ;;  %s62_s20 = sshll.u32 %s1272_s19, 4  ;;  %s54_s12 = int_to_ptr.vmem [resolvable:$true] %s53_s12  ;;  %s1387_s20 = int_to_ptr.vmem [resolvable:$true] %s62_s20 }
  0x28   :  { %s1217_s25 = scalar_lea.hbm %s1522_s2, 32 }
  0x29   :  { %p1218_p2 = scmp.ne.s32.totalorder %s1522_s2, %s1217_s25  ;;  %p1221_p3 = scmp.lt.u32.totalorder %s1217_s25, %s1522_s2 }
  0x2b   :  { %p1223_p4 = pnand %p1221_p3, %p1218_p2 }
  0x2d   :  { %1226 = shalt.err (!%p1223_p4)
}
  0x2e   :  { %s1227_s0 = scalar_lea.vmem %s54_s12, 32  ;;  %p1232_p6 = scmp.lt.s32.totalorder %s54_s12, %s54_s12 }
  0x2f   :  { %p1228_p5 = scmp.ne.s32.totalorder %s54_s12, %s1227_s0  ;;  %p1233_p7 = scmp.lt.s32.totalorder %s1227_s0, %s1227_s0 }
  0x31   :  { %p1234_p8 = por %p1233_p7, %p1232_p6 }
  0x33   :  { %p1235_p9 = pnand %p1234_p8, %p1228_p5 }
  0x35   :  { %1238 = shalt.err (!%p1235_p9)
}
  0x36   :  { %56 = dma.hbm_to_vmem [thread:$0]  %s1522_s2, 32, %s54_s12, [#allocation6]  }
  0x37   :  { %s1239_s1 = scalar_lea.hbm %s1523_s3, 256 }
  0x38   :  { %p1240_p10 = scmp.ne.s32.totalorder %s1523_s3, %s1239_s1  ;;  %p1243_p11 = scmp.lt.u32.totalorder %s1239_s1, %s1523_s3 }
  0x3a   :  { %p1245_p12 = pnand %p1243_p11, %p1240_p10 }
  0x3c   :  { %1248 = shalt.err (!%p1245_p12)
}
  0x3d   :  { %s1249_s24 = scalar_lea.vmem %s1387_s20, 256  ;;  %p1254_p0 = scmp.lt.s32.totalorder %s1387_s20, %s1387_s20 }
  0x3e   :  { %p1250_p13 = scmp.ne.s32.totalorder %s1387_s20, %s1249_s24  ;;  %p1255_p1 = scmp.lt.s32.totalorder %s1249_s24, %s1249_s24 }
  0x40   :  { %p1256_p2 = por %p1255_p1, %p1254_p0 }
  0x42   :  { %p1257_p3 = pnand %p1256_p2, %p1250_p13 }
  0x44   :  { %1260 = shalt.err (!%p1257_p3)
}
  0x45   :  { %68 = dma.hbm_to_vmem [thread:$0]  %s1523_s3, 256, %s1387_s20, [#allocation9], %s1269_s21, %s1269_s21, %s1270_s22  }
  0x46   :  { %1261 = dma.done.wait [#allocation4], 256  }
  0x47   :  { %1262 = vsyncadd [#allocation4], 4294967040 }
  0x48   :  { %1263 = dma.done.wait [#allocation6], 288  }
  0x49   :  { %1264 = vsyncadd [#allocation6], 4294967008 }
  0x4a   :  { %1265 = dma.done.wait [#allocation9], 256  }
  0x4b   :  { %1266 = vsyncadd [#allocation9], 4294967040  ;;  %vm110_vm0 = vcmask 130048   ;;  %v101_v1 = vld [vmem:[#allocation8] sm:$0xff]  ;;  %v102_v2 = vld [vmem:[#allocation8 + $0x8] sm:$0xff]  ;;  %vm194_vm1 = vcmask 97280  }
  0x4c   :  { %v99_v3 = vld [vmem:[#allocation3] sm:$0xff]  ;;  %v1106_v4 = vpack.c.bf16 %v102_v2, %v101_v1  ;;  %v100_v5 = vld [vmem:[#allocation3 + $0x8] sm:$0xf]  ;;  %v192_v6 = vld [vmem:[#allocation5] sm:$0xff]  ;;  %vm201_vm2 = vcmask 1043456   ;;  %vm1273_vm3 = vmmov 1  }
  0x4d   :  { %1028 = vmatprep.mubr.msk.f32.mxu0 %vm110_vm0, %v99_v3  ;;  %1035 = vmatprep.mubr.msk.f32.mxu1 %vm194_vm1, %v192_v6  ;;  %v954_v7 = vld [vmem:[%s1524_s4] ss:$0 sm:$0xff]  ;;  %vm1428_vm4 = vmpackc.low %vm201_vm2, %vm1273_vm3  ;;  %v193_v14 = vld [vmem:[#allocation5 + $0x8] sm:$0xf]  ;;  %vm369_vm5 = vcmask 261120   ;;  %v1274_v45 = vmov 0.0|0.0  }
  0x4e   :  { %1107 = vmatprep.subr.bf16.mxu0 %v1106_v4  ;;  %v358_v15 = vld [vmem:[%s1525_s5] sm:$0xff]  ;;  %v359_v16 = vld [vmem:[%s1525_s5 + $0x8] sm:$0xff]  ;;  %v360_v17 = vld [vmem:[%s1525_s5 + $0x10] sm:$0xff]  ;;  %vm1275_vm6 = vmmov 0   ;;  %v1276_v46 = vmov 0.0   ;;  %vm945_vm7 = vcmask 1024  }
  0x4f   :  { %1109 = vmatpush3.bf16.msra.mxu0 %v1106_v4  ;;  %v1122_v18 = vpack.c.bf16 %v359_v16, %v358_v15  ;;  %v361_v19 = vld [vmem:[%s1525_s5 + $0x18] sm:$0xff]  ;;  %v963_v26 = vld [vmem:[%s1527_s7] ss:$0 sm:$0xff]  ;;  %v610_v35 = vld [vmem:[%s1526_s6 + $0x8] sm:$0xff] }
  0x50   :  { %v1126_v20 = vpack.c.bf16 %v361_v19, %v360_v17  ;;  %v609_v34 = vld [vmem:[%s1526_s6] sm:$0xff]  ;;  %v611_v36 = vld [vmem:[%s1526_s6 + $0x10] sm:$0xff]  ;;  %v612_v38 = vld [vmem:[%s1526_s6 + $0x18] sm:$0xff] }
  0x51   :  { %v1142_v37 = vpack.c.bf16 %v610_v35, %v609_v34  ;;  %v1146_v39 = vpack.c.bf16 %v612_v38, %v611_v36  ;;  %v972_v47 = vld [vmem:[%s1528_s8] ss:$0 sm:$0xff]  ;;  %v779_v53 = vld [vmem:[%s1529_s9 + $0x8] sm:$0xff]  ;;  %v701_v55 = vld [vmem:[#allocation7] sm:$0x3] }
  0x52   :  { %1029 = vmatmul.mubr.msk.f32.vlgmr.msra.gmra.mrb[0].mxu0 %vm110_vm0, %v100_v5  ;;  %v778_v52 = vld [vmem:[%s1529_s9] sm:$0xff]  ;;  %v780_v57 = vld [vmem:[%s1529_s9 + $0x10] sm:$0xff]  ;;  %v781_v58 = vld [vmem:[%s1529_s9 + $0x18] sm:$0xff] }
  0x53   :  { %1042 = vmatprep.mubr.msk.f32.mxu0 %vm194_vm1, %v192_v6  ;;  %v1155_v56 = vpack.c.bf16 %v779_v53, %v778_v52  ;;  %v1158_v59 = vpack.c.bf16 %v781_v58, %v780_v57  ;;  %v863_v62 = vld [vmem:[%s1530_s10] sm:$0xff]  ;;  %v864_v63 = vld [vmem:[%s1530_s10 + $0x8] sm:$0xff] }
  0x54   :  { %v1161_v0 = vpack.c.bf16 %v864_v63, %v863_v62  ;;  %v977_v1 = vld [vmem:[%s1531_s11] ss:$0 sm:$0xff] }
 0x125   :  { %v1030_v8 = vpop.f32.mrb[0].mxu0 }
 0x126   :  { %v189_v9 = vadd.f32 %v1030_v8, %v954_v7  ;;  %v183_v10 = vpop.f32.mrb[1].mxu0 }
 0x127   :  { %v184_v11 = vadd.f32 %v954_v7, %v183_v10 }
 0x129   :  { %v1110_v13 = vpack.c.bf16 %v189_v9, %v184_v11 }
 0x12b   :  { %1112 = vmatprep.subr.msk.bf16.mxu1 %vm1428_vm4, %v1110_v13 }
 0x12c   :  { %1115 = vmatpush3.bf16.msk.msra.mxu1 %vm1428_vm4, %v1110_v13 }
 0x12d   :  { %1123 = vmatprep.subr.bf16.mxu1 %v1122_v18 }
 0x12f   :  { %1036 = vmatmul.mubr.msk.f32.vlgmr.msra.gmra.mrb[0].mxu1 %vm194_vm1, %v193_v14 }
 0x130   :  { %1125 = vmatpush3.bf16.msra.mxu1 %v1122_v18 }
 0x131   :  { %1127 = vmatprep.subr.bf16.mxu1 %v1126_v20 }
 0x134   :  { %1129 = vmatpush3.bf16.msra.mxu1 %v1126_v20 }
 0x135   :  { %1143 = vmatprep.subr.bf16.mxu1 %v1142_v37 }
 0x202   :  { %v1037_v21 = vpop.f32.mrb[0].mxu1 }
 0x203   :  { %v271_v22 = vpop.f32.mrb[1].mxu1 }
 0x204   :  { %v1116_v23 = vpack.c.bf16 %v1037_v21, %v271_v22 }
 0x206   :  { %1118 = vmatprep.subr.msk.bf16.mxu0 %vm1428_vm4, %v1116_v23 }
 0x207   :  { %1121 = vmatpush3.bf16.msk.msra.mxu0 %vm1428_vm4, %v1116_v23 }
 0x20a   :  { %1043 = vmatmul.mubr.msk.f32.vlgmr.msra.gmra.mrb[2].mxu0 %vm194_vm1, %v193_v14 }
 0x20b   :  { %1060 = vmatprep.mubr.msk.f32.mxu0 %vm194_vm1, %v192_v6 }
 0x2dd   :  { %v1044_v24 = vpop.f32.mrb[2].mxu0 }
 0x2de   :  { %v349_v25 = vpop.f32.mrb[3].mxu0 }
 0x2df   :  { %1053 = vmatprep.mubr.msk.f32.mxu1 %vm369_vm5, %v349_v25 }
 0x2e0   :  { %1054 = vmatmul.mubr.msk.f32.vlgmr.msra.gmra.mrb[2].mxu1 %vm369_vm5, %v1044_v24 }
 0x2e1   :  { %1145 = vmatpush3.bf16.msra.mxu1 %v1142_v37 }
 0x2e2   :  { %1147 = vmatprep.subr.bf16.mxu1 %v1146_v39 }
 0x2e5   :  { %1149 = vmatpush3.bf16.msra.mxu1 %v1146_v39 }
 0x2e6   :  { %1160 = vmatprep.subr.bf16.mxu1 %v1274_v45 }
 0x3b3   :  { %v1055_v27 = vpop.f32.mrb[2].mxu1 }
 0x3b4   :  { %v448_v28 = vadd.f32 %v1055_v27, %v963_v26  ;;  %v442_v29 = vpop.f32.mrb[3].mxu1 }
 0x3b5   :  { %v443_v30 = vadd.f32 %v963_v26, %v442_v29 }
 0x3b6   :  { %v452_v31 = vmax.f32 %v448_v28, 0.0 }
 0x3b7   :  { %v451_v32 = vmax.f32 %v443_v30, 0.0 }
 0x3b9   :  { %v1130_v33 = vpack.c.bf16 %v452_v31, %v451_v32 }
 0x3bb   :  { %1132 = vmatprep.subr.msk.bf16.mxu0 %vm1428_vm4, %v1130_v33 }
 0x3bc   :  { %1135 = vmatpush3.bf16.msk.msra.mxu0 %vm1428_vm4, %v1130_v33 }
 0x3bf   :  { %1061 = vmatmul.mubr.msk.f32.vlgmr.msra.gmra.mrb[4].mxu0 %vm194_vm1, %v193_v14 }
 0x3c0   :  { %1067 = vmatprep.mubr.msk.f32.mxu0 %vm194_vm1, %v192_v6  ;;  %v979_v6 = vld [vmem:[#allocation2] ss:$0 sm:$0xff] }
 0x492   :  { %v1062_v40 = vpop.f32.mrb[4].mxu0 }
 0x493   :  { %v522_v41 = vpop.f32.mrb[5].mxu0 }
 0x494   :  { %v1136_v42 = vpack.c.bf16 %v1062_v40, %v522_v41 }
 0x496   :  { %1138 = vmatprep.subr.msk.bf16.mxu0 %vm1428_vm4, %v1136_v42 }
 0x497   :  { %1141 = vmatpush3.bf16.msk.msra.mxu0 %vm1428_vm4, %v1136_v42 }
 0x498   :  { %1150 = vmatprep.subr.bf16.mxu0 %v1274_v45 }
 0x49a   :  { %1068 = vmatmul.mubr.msk.f32.vlgmr.msra.gmra.mrb[6].mxu0 %vm194_vm1, %v193_v14 }
 0x49b   :  { %1085 = vmatprep.mubr.msk.f32.mxu0 %vm1275_vm6, %v1276_v46 }
 0x56d   :  { %v1069_v43 = vpop.f32.mrb[6].mxu0 }
 0x56e   :  { %v600_v44 = vpop.f32.mrb[7].mxu0 }
 0x56f   :  { %1078 = vmatprep.mubr.msk.f32.mxu1 %vm369_vm5, %v600_v44 }
 0x570   :  { %1079 = vmatmul.mubr.msk.f32.vlgmr.msra.gmra.mrb[4].mxu1 %vm369_vm5, %v1069_v43 }
 0x571   :  { %1103 = vmatprep.mubr.msk.f32.mxu1 %vm1275_vm6, %v1276_v46  ;;  %1162 = vmatpush3.bf16.msra.mxu1 %v1161_v0 }
 0x643   :  { %v1080_v48 = vpop.f32.mrb[4].mxu1 }
 0x644   :  { %v698_v49 = vadd.f32 %v1080_v48, %v972_v47  ;;  %v692_v50 = vpop.f32.mrb[5].mxu1 }
 0x645   :  { %v693_v51 = vadd.f32 %v972_v47, %v692_v50 }
 0x647   :  { %v1151_v54 = vpack.c.bf16 %v698_v49, %v693_v51 }
 0x649   :  { %1153 = vmatpush3.bf16.msk.msra.mxu0 %vm1428_vm4, %v1151_v54 }
 0x64a   :  { %1154 = vmatprep.subr.bf16.mxu0 %v1274_v45 }
 0x64c   :  { %1086 = vmatmul.mubr.msk.f32.vlgmr.msra.gmra.mrb[8].mxu0 %vm194_vm1, %v701_v55 }
 0x64d   :  { %1156 = vmatpush3.bf16.msra.mxu0 %v1155_v56  ;;  %1096 = vmatprep.mubr.msk.f32.mxu0 %vm1275_vm6, %v1276_v46 }
 0x64e   :  { %1157 = vmatprep.subr.bf16.mxu0 %v1274_v45 }
 0x651   :  { %1159 = vmatpush3.bf16.msra.mxu0 %v1158_v59 }
 0x71f   :  { %v774_v60 = vpop.f32.mrb[8].mxu0 }
 0x720   :  { %v1087_v61 = vpop.f32.mrb[9].mxu0  ;;  %1097 = vmatmul.mubr.msk.f32.vlgmr.msra.gmra.mrb[10].mxu0 %vm369_vm5, %v774_v60 }
 0x7f3   :  { %v858_v2 = vpop.f32.mrb[10].mxu0 }
 0x7f4   :  { %v859_v3 = vadd.f32 %v977_v1, %v858_v2  ;;  %v1098_v4 = vpop.f32.mrb[11].mxu0 }
 0x7f6   :  { %v862_v5 = vmax.f32 %v859_v3, 0.0 }
 0x7f8   :  { %1104 = vmatmul.mubr.msk.f32.vlgmr.msra.gmra.mrb[6].mxu1 %vm110_vm0, %v862_v5 }
 0x8cb   :  { %v941_v7 = vpop.f32.mrb[6].mxu1 }
 0x8cc   :  { %v942_v8 = vadd.f32 %v979_v6, %v941_v7  ;;  %v1105_v9 = vpop.f32.mrb[7].mxu1 }
 0x8ce   :  { %946 = vst.msk [vmem:[%s1533_s13] sm:$0x3] %vm945_vm7, %v942_v8 }
 0x8cf   :  { %951 = vsyncpa [#allocation4], 1 }
 0x8d0   :  { %952 = vsyncpa [#allocation6], 1 }
 0x8d1   :  { %953 = vsyncpa [#allocation9], 1 }

</bundles_post_ra>
